<compile_context>
chip_gen: v5e
topology: v5e:2x2
jax: 0.10.0
libtpu: 0.0.40
codegen_flags: <defaults>
</compile_context>

<pallas_src>
import functools

import jax
import jax.numpy as jnp
from jax.experimental import pallas as pl
from jax.experimental.pallas import tpu as pltpu

LANES = 128


def _focal_loss_kernel(x_ref, t_ref, out_ref, *, gamma, rows, block_rows,
                       tiles_per_core, num_row_blocks, needs_mask):
    core = pl.program_id(0)
    tile = pl.program_id(1)

    # The (8, 128) output block is resident across the reduction ("arbitrary")
    # axis -> zero it on the first step of each core's sweep.
    @pl.when(tile == 0)
    def _():
        out_ref[...] = jnp.zeros_like(out_ref)

    x = x_ref[...].astype(jnp.float32)
    t = t_ref[...].astype(jnp.float32)

    # Stable softplus(-x) = relu(-x) + log1p(exp(-|x|))        (1 exp + 1 log)
    sp = jnp.maximum(-x, 0.0) + jnp.log1p(jnp.exp(-jnp.abs(x)))

    # BCE-with-logits term: x - x*t + softplus(-x)
    loss = x - x * t + sp

    # invprobs = logsigmoid(-x*(2t-1)) == -softplus(-x) - t*x for t in {0,1}.
    # TODO(synk): exact only for binary targets (same assumption as the module).
    invprobs = -sp - t * x

    loss = jnp.exp(invprobs * gamma) * loss                    # (1 exp)

    # Collapse the tile to one (8, 128) vreg and add into the resident
    # accumulator (cross-vreg add tree; replaces per-vreg acc load/add/store).
    def _acc(v):
        out_ref[...] += jnp.sum(v.reshape(block_rows // 8, 8, LANES), axis=0)

    if needs_mask:
        # Only the edge tile (and any clamped duplicate tile past the end of
        # the data) can contain rows beyond the valid range: mask there only.
        gtile = core * tiles_per_core + tile
        is_edge = gtile >= num_row_blocks - 1

        @pl.when(is_edge)
        def _():
            row = jax.lax.broadcasted_iota(jnp.int32, (block_rows, LANES), 0)
            valid = (gtile * block_rows + row) < rows   # row-only: no i32 overflow
            _acc(jnp.where(valid, loss, 0.0))

        @pl.when(jnp.logical_not(is_edge))
        def _():
            _acc(loss)
    else:
        _acc(loss)


def _num_tensorcores():
    """2 only on megacore parts (v7x); v5e / v6e have a single TensorCore."""
    try:
        kind = jax.devices()[0].device_kind.lower()
    except Exception:
        return 1
    return 2 if ("v7" in kind or "7x" in kind) else 1


def focal_loss(inp, target, gamma=2.0, block_rows=2048, num_cores=None):
    if inp.shape != target.shape:
        raise ValueError(
            "Target size ({}) must be the same as input size ({})".format(
                target.shape, inp.shape))
    if inp.ndim < 2:
        raise ValueError("focal_loss expects inputs with at least 2 dims (N, C, ...)")

    # loss.sum(dim=1).mean()  ==  total_sum / (numel / C)
    denom = inp.size // inp.shape[1]
    n = inp.size
    rows = -(-n // LANES)                                      # cdiv(n, 128)

    # Sublane multiple for the narrower input dtype (8 / 16 / 32 for 4/2/1 B).
    itemsize = min(jnp.dtype(inp.dtype).itemsize, jnp.dtype(target.dtype).itemsize)
    row_mult = 8 * max(1, 4 // int(itemsize))

    if num_cores is None:
        num_cores = _num_tensorcores()

    block_rows = max(row_mult, (block_rows // row_mult) * row_mult)
    block_rows = min(block_rows, -(-rows // row_mult) * row_mult)

    num_row_blocks = -(-rows // block_rows)
    if num_row_blocks < 2:
        num_cores = 1
    tiles_per_core = -(-num_row_blocks // num_cores)
    total_tiles = num_cores * tiles_per_core

    x = inp.reshape(-1)
    t = target.reshape(-1)
    pad = rows * LANES - n
    if pad:
        # Only the <128-element remainder is padded, with loss-neutral values
        # (x=+30, t=1 -> focal loss ~1e-39), so no mask is needed for it and
        # there is no full-array copy when numel is already a multiple of 128.
        x = jnp.pad(x, (0, pad), constant_values=30.0)
        t = jnp.pad(t, (0, pad), constant_values=1.0)
    x = x.reshape(rows, LANES)
    t = t.reshape(rows, LANES)

    # If the 2-core split leaves a tile past the last real row-block, clamp
    # its DMA to the last real block; the in-kernel row mask zeroes it.
    if total_tiles == num_row_blocks:
        def in_map(c, ti):
            return (c * tiles_per_core + ti, 0)
    else:
        last_block = num_row_blocks - 1

        def in_map(c, ti):
            return (jnp.minimum(c * tiles_per_core + ti, last_block), 0)

    needs_mask = (rows % block_rows != 0) or (total_tiles != num_row_blocks)

    kernel = functools.partial(
        _focal_loss_kernel,
        gamma=float(gamma),
        rows=rows,
        block_rows=block_rows,
        tiles_per_core=tiles_per_core,
        num_row_blocks=num_row_blocks,
        needs_mask=needs_mask,
    )

    partials = pl.pallas_call(
        kernel,
        out_shape=jax.ShapeDtypeStruct((num_cores * 8, LANES), jnp.float32),
        grid=(num_cores, tiles_per_core),
        in_specs=[
            pl.BlockSpec((block_rows, LANES), in_map),
            pl.BlockSpec((block_rows, LANES), in_map),
        ],
        out_specs=pl.BlockSpec((8, LANES), lambda c, ti: (c, 0)),
        compiler_params=pltpu.CompilerParams(
            dimension_semantics=("parallel", "arbitrary"),
            vmem_limit_bytes=32 * 1024 * 1024,
        ),
    )(x, t)

    # Tiny (num_cores*8, 128) slab -> scalar, then the mean over numel / C.
    return jnp.sum(partials) / jnp.float32(denom)


def _focal_loss_ref(inp, target, gamma=2.0):
    x = inp.astype(jnp.float32)
    t = target.astype(jnp.float32)
    max_val = jnp.maximum(-x, 0.0)
    loss = x - x * t + max_val + jnp.log(
        jnp.exp(-max_val) + jnp.exp(-x - max_val))
    invprobs = jax.nn.log_sigmoid(-x * (t * 2.0 - 1.0))
    loss = jnp.exp(invprobs * gamma) * loss
    return loss.sum(axis=1).mean()


if __name__ == "__main__":
    key = jax.random.PRNGKey(0)
    k1, k2, k3, k4 = jax.random.split(key, 4)

    # N=2, C=4, H=16, W=16 (NCHW, as the PyTorch module would receive).
    shape = (2, 4, 16, 16)
    x = jax.random.normal(k1, shape, dtype=jnp.float32) * 2.0
    tgt = jax.random.bernoulli(k2, p=0.5, shape=shape).astype(jnp.float32)

    out = focal_loss(x, tgt, gamma=2.0)
    out = jax.block_until_ready(out)
    ref = _focal_loss_ref(x, tgt, gamma=2.0)
    assert jnp.allclose(out, ref, rtol=1e-5, atol=1e-5), (out, ref)

    # Odd (non-128-multiple) shape: exercises the neutral remainder pad and
    # the pl.when-gated edge-tile row mask.
    shape2 = (2, 3, 5, 7)
    x2 = jax.random.normal(k3, shape2, dtype=jnp.float32) * 2.0
    tgt2 = jax.random.bernoulli(k4, p=0.5, shape=shape2).astype(jnp.float32)

    out2 = focal_loss(x2, tgt2, gamma=2.0)
    out2 = jax.block_until_ready(out2)
    ref2 = _focal_loss_ref(x2, tgt2, gamma=2.0)
    assert jnp.allclose(out2, ref2, rtol=1e-5, atol=1e-5), (out2, ref2)

    print("KERNEL_OK")
</pallas_src>

<mosaic_0001>
module attributes {stable_mosaic.version = 11 : i64} {
  func.func @_focal_loss_kernel(%arg0: i32, %arg1: i32, %arg2: memref<16x128xf32, #tpu.memory_space<vmem>>, %arg3: memref<16x128xf32, #tpu.memory_space<vmem>>, %arg4: memref<8x128xf32, #tpu.memory_space<vmem>>) attributes {dimension_semantics = [#tpu.dimension_semantics<parallel>, #tpu.dimension_semantics<arbitrary>], iteration_bounds = array<i64: 1, 1>, scalar_prefetch = 0 : i64, scratch_operands = 0 : i64, tpu.core_type = #tpu.core_type<tc>, window_params = [{transform_indices = @transform_0, window_bounds = array<i64: 16, 128>}, {transform_indices = @transform_1, window_bounds = array<i64: 16, 128>}, {transform_indices = @transform_2, window_bounds = array<i64: 8, 128>}]} {
    %c0_i32 = arith.constant 0 : i32
    %0 = arith.cmpi eq, %arg1, %c0_i32 : i32
    %1 = arith.extui %0 : i1 to i32
    %c0_i32_0 = arith.constant 0 : i32
    %2 = arith.cmpi ne, %1, %c0_i32_0 : i32
    scf.if %2 {
      %cst_13 = arith.constant 0.000000e+00 : f32
      %31 = vector.broadcast %cst_13 : f32 to vector<8x128xf32>
      %c0_14 = arith.constant 0 : index
      %c0_15 = arith.constant 0 : index
      %32 = vector.load %arg4[%c0_14, %c0_15] : memref<8x128xf32, #tpu.memory_space<vmem>>, vector<8x128xf32>
      tpu.vector_store %arg4[%c0_14, %c0_15], %31 {strides = array<i32>} : memref<8x128xf32, #tpu.memory_space<vmem>>, vector<8x128xf32>,
    } else {
    }
    %c0 = arith.constant 0 : index
    %c0_1 = arith.constant 0 : index
    %3 = vector.load %arg2[%c0, %c0_1] : memref<16x128xf32, #tpu.memory_space<vmem>>, vector<16x128xf32>
    %c0_2 = arith.constant 0 : index
    %c0_3 = arith.constant 0 : index
    %4 = vector.load %arg3[%c0_2, %c0_3] : memref<16x128xf32, #tpu.memory_space<vmem>>, vector<16x128xf32>
    %cst = arith.constant 0.000000e+00 : f32
    %5 = vector.broadcast %cst : f32 to vector<16x128xf32>
    %6 = arith.subf %5, %3 : vector<16x128xf32>
    %cst_4 = arith.constant 0.000000e+00 : f32
    %7 = vector.broadcast %cst_4 : f32 to vector<16x128xf32>
    %8 = arith.maximumf %6, %7 : vector<16x128xf32>
    %9 = math.absf %3 : vector<16x128xf32>
    %cst_5 = arith.constant 0.000000e+00 : f32
    %10 = vector.broadcast %cst_5 : f32 to vector<16x128xf32>
    %11 = arith.subf %10, %9 : vector<16x128xf32>
    %12 = math.exp %11 : vector<16x128xf32>
    %13 = math.log1p %12 : vector<16x128xf32>
    %14 = arith.addf %8, %13 : vector<16x128xf32>
    %15 = arith.mulf %3, %4 : vector<16x128xf32>
    %16 = arith.subf %3, %15 : vector<16x128xf32>
    %17 = arith.addf %16, %14 : vector<16x128xf32>
    %cst_6 = arith.constant 0.000000e+00 : f32
    %18 = vector.broadcast %cst_6 : f32 to vector<16x128xf32>
    %19 = arith.subf %18, %14 : vector<16x128xf32>
    %20 = arith.mulf %4, %3 : vector<16x128xf32>
    %21 = arith.subf %19, %20 : vector<16x128xf32>
    %cst_7 = arith.constant 2.000000e+00 : f32
    %22 = vector.broadcast %cst_7 : f32 to vector<16x128xf32>
    %23 = arith.mulf %21, %22 : vector<16x128xf32>
    %24 = math.exp %23 : vector<16x128xf32>
    %25 = arith.mulf %24, %17 : vector<16x128xf32>
    %c0_8 = arith.constant 0 : index
    %c0_9 = arith.constant 0 : index
    %26 = vector.load %arg4[%c0_8, %c0_9] : memref<8x128xf32, #tpu.memory_space<vmem>>, vector<8x128xf32>
    %27 = vector.shape_cast %25 : vector<16x128xf32> to vector<2x8x128xf32>
    %cst_10 = arith.constant dense<0.000000e+00> : vector<8x128xf32>
    %28 = vector.multi_reduction <add>, %27, %cst_10 [0] : vector<2x8x128xf32> to vector<8x128xf32>
    %29 = arith.addf %26, %28 : vector<8x128xf32>
    %c0_11 = arith.constant 0 : index
    %c0_12 = arith.constant 0 : index
    %30 = vector.load %arg4[%c0_11, %c0_12] : memref<8x128xf32, #tpu.memory_space<vmem>>, vector<8x128xf32>
    tpu.vector_store %arg4[%c0_11, %c0_12], %29 {strides = array<i32>} : memref<8x128xf32, #tpu.memory_space<vmem>>, vector<8x128xf32>,
    return
  }
  func.func @transform_0(%arg0: i32, %arg1: i32) -> (i32, i32) {
    %c1_i32 = arith.constant 1 : i32
    %0 = arith.muli %arg0, %c1_i32 : i32
    %1 = arith.addi %0, %arg1 : i32
    %c0_i32 = arith.constant 0 : i32
    %c0_i32_0 = arith.constant 0 : i32
    return %1, %c0_i32 : i32, i32
  }
  func.func @transform_1(%arg0: i32, %arg1: i32) -> (i32, i32) {
    %c1_i32 = arith.constant 1 : i32
    %0 = arith.muli %arg0, %c1_i32 : i32
    %1 = arith.addi %0, %arg1 : i32
    %c0_i32 = arith.constant 0 : i32
    %c0_i32_0 = arith.constant 0 : i32
    return %1, %c0_i32 : i32, i32
  }
  func.func @transform_2(%arg0: i32, %arg1: i32) -> (i32, i32) {
    %c0_i32 = arith.constant 0 : i32
    %c0_i32_0 = arith.constant 0 : i32
    return %arg0, %c0_i32 : i32, i32
  }
}

</mosaic_0001>

<bundles_post_ra>
// kernel: tpu_custom_call.1
= control target key start
LH: loop header
LB: loop body
LE: loop exit
PB: predicated region body
PF: predicated region fallthrough
CT: control target
= control target key end

     0   :  { %7 = vsyncpa [#allocation3], 0  ;;  %s262_s0 = inlined_call_operand.hbm [shape: f32[16,128], index: 0, kind: input, shape index: {}]   ;;  %s263_s1 = inlined_call_operand.hbm [shape: f32[16,128], index: 1, kind: input, shape index: {}]   ;;  %s264_s2 = inlined_call_operand.hbm [shape: f32[8,128], index: 2, kind: output, shape index: {}]  }
   0x1   :  { %8 = vsyncpa [#allocation6], 0 }
   0x2   :  { %9 = vsyncpa [#allocation4], 0  ;;  %s18_s11 = sshll.u32 %s262_s0, 4  ;;  %s233_s12 = smov [#allocation2]   ;;  %s19_s11 = int_to_ptr.hbm [resolvable:$true] %s18_s11 }
   0x3   :  { %s20_s13 = sshll.u32 %s233_s12, 4  ;;  %s35_s16 = sshll.u32 %s263_s1, 4  ;;  %s21_s13 = int_to_ptr.vmem [resolvable:$true] %s20_s13  ;;  %s36_s16 = int_to_ptr.hbm [resolvable:$true] %s35_s16 }
   0x4   :  { %s234_s17 = smov 128   ;;  %s235_s18 = smov 8  }
   0x5   :  { %26 = dma.hbm_to_vmem [thread:$0]  %s19_s11, 256, %s21_s13, [#allocation3], %s234_s17, %s234_s17, %s235_s18  }
   0x6   :  { %s236_s19 = smov [#allocation5]  }
   0x7   :  { %s37_s20 = sshll.u32 %s236_s19, 4  ;;  %s38_s20 = int_to_ptr.vmem [resolvable:$true] %s37_s20 }
   0x8   :  { %43 = dma.hbm_to_vmem [thread:$0]  %s36_s16, 256, %s38_s20, [#allocation6], %s234_s17, %s234_s17, %s235_s18  }
   0x9   :  { %227 = dma.done.wait [#allocation3], 256  }
   0xa   :  { %228 = vsyncadd [#allocation3], 4294967040 }
   0xb   :  { %229 = dma.done.wait [#allocation6], 256  }
   0xc   :  { %230 = vsyncadd [#allocation6], 4294967040  ;;  %v61_v0 = vld [vmem:[#allocation2] sm:$0xff]  ;;  %v62_v1 = vld [vmem:[#allocation2 + $0x8] sm:$0xff]  ;;  %s237_s0 = smov [#allocation7]   ;;  %s126_s23 = sshll.u32 %s264_s2, 4  ;;  %s127_s23 = int_to_ptr.hbm [resolvable:$true] %s126_s23 }
   0xd   :  { %v69_v2 = vand.u32 2147483647, %v61_v0  ;;  %v70_v3 = vand.u32 2147483647, %v62_v1  ;;  %v65_v15 = vsub.f32 0.0, %v61_v0  ;;  %v66_v18 = vsub.f32 0.0, %v62_v1 }
   0xe   :  { %v63_v25 = vld [vmem:[#allocation5] sm:$0xff]  ;;  %v64_v28 = vld [vmem:[#allocation5 + $0x8] sm:$0xff]  ;;  %s124_s1 = sshll.u32 %s237_s0, 4  ;;  %s125_s1 = int_to_ptr.vmem [resolvable:$true] %s124_s1 }
   0xf   :  { %v71_v4 = vsub.f32 0.0, %v69_v2  ;;  %v72_v5 = vsub.f32 0.0, %v70_v3  ;;  %v67_v22 = vmax.f32 %v65_v15, 0.0  ;;  %v68_v26 = vmax.f32 %v66_v18, 0.0 }
  0x10   :  { %v97_v33 = vmul.f32 %v63_v25, %v61_v0  ;;  %v98_v35 = vmul.f32 %v64_v28, %v62_v1 }
  0x11   :  { %v73_v6 = vmul.f32 1.442695, %v71_v4  ;;  %v75_v7 = vmul.f32 1.442695, %v72_v5 }
  0x12   :  { %v99_v43 = vsub.f32 %v61_v0, %v97_v33  ;;  %v100_v45 = vsub.f32 %v62_v1, %v98_v35 }
  0x13   :  { %143 = vpow2.f32 %v73_v6 }
  0x14   :  { %145 = vpow2.f32 %v75_v7 }
  0x19   :  { %v144_v8 = vpop.eup %143 }
  0x1a   :  { %v146_v9 = vpop.eup %145  ;;  %v77_v10 = vadd.f32 1.0, %v144_v8  ;;  %v80_v11 = vmul.f32 -0.5, %v144_v8  ;;  %v83_v16 = vand.u32 2147483647, %v144_v8 }
  0x1b   :  { %v86_v12 = vadd.f32 1.0, %v146_v9  ;;  %v89_v13 = vmul.f32 -0.5, %v146_v9  ;;  %v92_v19 = vand.u32 2147483647, %v146_v9 }
  0x1c   :  { %147 = vlog2.f32 %v77_v10  ;;  %v81_v14 = vadd.f32 1.0, %v80_v11  ;;  %vm84_vm0 = vcmp.lt.f32.partialorder %v83_v16, 0.0004427343 }
  0x1d   :  { %149 = vlog2.f32 %v86_v12  ;;  %v90_v17 = vadd.f32 1.0, %v89_v13  ;;  %vm93_vm1 = vcmp.lt.f32.partialorder %v92_v19, 0.0004427343 }
  0x1e   :  { %v82_v20 = vmul.f32 %v144_v8, %v81_v14 }
  0x1f   :  { %v91_v23 = vmul.f32 %v146_v9, %v90_v17 }
  0x22   :  { %v148_v21 = vpop.eup %147 }
  0x23   :  { %v150_v24 = vpop.eup %149  ;;  %v79_v27 = vmul.f32 0.6931472, %v148_v21 }
  0x24   :  { %v88_v29 = vmul.f32 0.6931472, %v150_v24 }
  0x25   :  { %v85_v30 = vsel %vm84_vm0, %v82_v20, %v79_v27 }
  0x26   :  { %v94_v31 = vsel %vm93_vm1, %v91_v23, %v88_v29  ;;  %v95_v32 = vadd.f32 %v85_v30, %v67_v22 }
  0x27   :  { %v96_v34 = vadd.f32 %v94_v31, %v68_v26 }
  0x28   :  { %v103_v36 = vsub.f32 0.0, %v95_v32  ;;  %v101_v46 = vadd.f32 %v99_v43, %v95_v32 }
  0x29   :  { %v104_v37 = vsub.f32 0.0, %v96_v34  ;;  %v102_v47 = vadd.f32 %v100_v45, %v96_v34 }
  0x2a   :  { %v105_v38 = vsub.f32 %v103_v36, %v97_v33 }
  0x2b   :  { %v106_v39 = vsub.f32 %v104_v37, %v98_v35 }
  0x2c   :  { %v107_v40 = vmul.f32 2.0, %v105_v38 }
  0x2d   :  { %v108_v41 = vmul.f32 2.0, %v106_v39 }
  0x2e   :  { %v109_v42 = vmul.f32 1.442695, %v107_v40 }
  0x2f   :  { %v111_v44 = vmul.f32 1.442695, %v108_v41 }
  0x30   :  { %151 = vpow2.f32 %v109_v42 }
  0x31   :  { %153 = vpow2.f32 %v111_v44 }
  0x36   :  { %v152_v48 = vpop.eup %151 }
  0x37   :  { %v154_v49 = vpop.eup %153  ;;  %v113_v50 = vmul.f32 %v152_v48, %v101_v46 }
  0x38   :  { %v114_v51 = vmul.f32 %v154_v49, %v102_v47 }
  0x3a   :  { %v116_v52 = vadd.f32 %v114_v51, %v113_v50 }
  0x3c   :  { %118 = vst [vmem:[#allocation7] sm:$0xff] %v116_v52 }
  0x3d   :  { %129 = dma.vmem_to_hbm [thread:$0]  %s125_s1, 128, %s127_s23, [#allocation4]  }
  0x3e   :  { %231 = dma.done.wait [#allocation4], 128  }
  0x3f   :  { %232 = vsyncadd [#allocation4], 4294967168 }
  0x40   :  { %134 = vsyncpa [#allocation3], 1 }
  0x41   :  { %135 = vsyncpa [#allocation6], 1 }
  0x42   :  { %136 = vsyncpa [#allocation4], 1 }

</bundles_post_ra>
